<compile_context>
chip_gen: v7x
topology: tpu7x:2x2x1
jax: 0.10.0
libtpu: 0.0.40
codegen_flags: <defaults>
</compile_context>

<pallas_src>
import jax
import jax.numpy as jnp
from jax.experimental import pallas as pl
from jax.experimental.pallas import tpu as pltpu


def _residual_block_kernel(x_ref, w_ref, b_ref, o_ref):
    """One (C, T) slab of pixels: y = relu(W' @ x + b' + x).

    x_ref : (C, T)  f32/bf16  input pixels (channels on sublanes, pixels on lanes)
    w_ref : (C, C)  bf16      gamma-folded conv weight [C_out, C_in]
    b_ref : (C, 1)  f32       gamma-folded conv bias
    o_ref : (C, T)  same dtype as x
    """
    x = x_ref[...]                                            # (C, T)
    # main: 1x1 conv == matmul over channels on the MXU (bf16 in, f32 acc)
    y = jnp.dot(w_ref[...], x.astype(jnp.bfloat16),
                preferred_element_type=jnp.float32)           # (C, T) f32
    y = y + b_ref[...]                                        # bias, lane-bcast
    # shortcut: identity residual add (f32)
    y = y + x.astype(jnp.float32)
    # post_act: ReLU
    o_ref[...] = jnp.maximum(y, 0.0).astype(o_ref.dtype)


def residual_block_pallas(x_nchw, w_oi, b, gamma, *,
                          tile_bytes=4 << 20, vmem_cap_bytes=40 << 20):
    """x_nchw: [N, C, H, W] (f32 or bf16).  w_oi: [C_out, C_in] (PyTorch conv1x1
    weight with the trailing 1x1 squeezed).  b, gamma: [C].
    Returns [N, C, H, W] in x's dtype."""
    N, C, H, W = x_nchw.shape
    HW = H * W
    x = x_nchw.reshape(N, C, HW)
    itemsize = x.dtype.itemsize

    # Fold layer_scale into the conv: gamma*(Wx+b) = (gamma[:,None]*W) x + gamma*b
    w_folded = (gamma[:, None] * w_oi).astype(jnp.bfloat16)   # [C_out, C_in]
    b_folded = (gamma * b).astype(jnp.float32).reshape(C, 1)  # [C, 1]

    # ---- pixel-tile selection: full extent or a multiple of 128 lanes -------
    if HW <= 128:
        # Tiny feature maps (e.g. 7x7): full-extent last dim is always legal.
        t = HW
    else:
        # Byte-targeted tile, clamped by the live-VMEM cap (2 in + 2 out bufs).
        t_cap = min(tile_bytes // (C * itemsize),
                    vmem_cap_bytes // (4 * C * itemsize))
        t_cap = max(128, (t_cap // 128) * 128)
        t = HW if HW <= t_cap else t_cap
        # v7x megacore: make sure both TensorCores get work (>= ~8 blocks),
        # but never shrink below a full 128-lane vreg row.
        while t > 128 and N * pl.cdiv(HW, t) < 8:
            t = max(128, ((t // 2) // 128) * 128)

    n_hw = pl.cdiv(HW, t)       # partial last block handled by Pallas masking
    grid = (N, n_hw)

    # Explicit scoped-VMEM limit: above v5e's 16 MiB default, below v7x's
    # 64 MiB physical.  (Tile selection already keeps live buffers <= ~40 MiB.)
    vmem_needed = 4 * C * t * itemsize + 2 * (C * C * 2 + C * 4)
    vmem_limit = int(min(max(2 * vmem_needed, 32 << 20), 48 << 20))

    cost = pl.CostEstimate(
        flops=2 * N * HW * C * C,
        transcendentals=0,
        bytes_accessed=2 * N * C * HW * itemsize + C * C * 2 + C * 4,
    )

    out = pl.pallas_call(
        _residual_block_kernel,
        out_shape=jax.ShapeDtypeStruct((N, C, HW), x.dtype),
        grid_spec=pltpu.PrefetchScalarGridSpec(
            num_scalar_prefetch=0,
            grid=grid,
            in_specs=[
                # x tile: squeeze batch dim, kernel sees (C, t)
                pl.BlockSpec((None, C, t), lambda n, j: (n, 0, j)),
                # gamma-folded conv weight, grid-invariant (DMA'd once)
                pl.BlockSpec((C, C), lambda n, j: (0, 0)),
                # gamma-folded conv bias, grid-invariant
                pl.BlockSpec((C, 1), lambda n, j: (0, 0)),
            ],
            out_specs=pl.BlockSpec((None, C, t), lambda n, j: (n, 0, j)),
        ),
        compiler_params=pltpu.CompilerParams(
            dimension_semantics=("parallel", "parallel"),
            vmem_limit_bytes=vmem_limit),
        cost_estimate=cost,
    )(x, w_folded, b_folded)

    return out.reshape(N, C, H, W)


def _reference_bf16(x_nchw, w_oi, b, gamma):
    """Pure-JAX reference matching the kernel's bf16-matmul semantics (f32 out)."""
    N, C, H, W = x_nchw.shape
    x = x_nchw.reshape(N, C, H * W)
    wf = (gamma[:, None] * w_oi).astype(jnp.bfloat16).astype(jnp.float32)
    xb = x.astype(jnp.bfloat16).astype(jnp.float32)
    res = jnp.einsum('oc,nct->not', wf, xb)
    res = res + (gamma * b).reshape(1, C, 1)
    res = res + x
    res = jnp.maximum(res, 0.0)
    return res.reshape(N, C, H, W)


def _reference_f32(x_nchw, w_oi, b, gamma):
    """Pure-JAX f32 reference matching the PyTorch forward semantics."""
    N, C, H, W = x_nchw.shape
    x = x_nchw.reshape(N, C, H * W)
    res = jnp.einsum('oc,nct->not', w_oi, x) + b.reshape(1, C, 1)   # conv1x1
    res = res * gamma.reshape(1, C, 1)                               # layer_scale
    res = res + x                                                    # + shortcut
    res = jnp.maximum(res, 0.0)                                      # ReLU
    return res.reshape(N, C, H, W)


if __name__ == "__main__":
    key = jax.random.PRNGKey(0)
    k_x, k_w, k_b, k_g = jax.random.split(key, 4)

    N, C, H, W = 2, 4, 16, 16
    x = jax.random.normal(k_x, (N, C, H, W), dtype=jnp.float32)

    # PyTorch conv1x1 weight is [C_out, C_in, 1, 1]; pass it as [C_out, C_in].
    w = jax.random.normal(k_w, (C, C), dtype=jnp.float32) * 0.1
    b = jax.random.normal(k_b, (C,), dtype=jnp.float32) * 0.1
    gamma = 1.0 + 0.01 * jax.random.normal(k_g, (C,), dtype=jnp.float32)

    # f32 activation path.
    out = jax.block_until_ready(residual_block_pallas(x, w, b, gamma))
    assert out.shape == (N, C, H, W) and out.dtype == jnp.float32

    # Tight check vs a reference with identical bf16-matmul semantics.
    ref_bf16 = _reference_bf16(x, w, b, gamma)
    assert jnp.allclose(out, ref_bf16, atol=1e-4, rtol=1e-4), "bf16-matched ref mismatch"

    # Loose check vs the exact f32 PyTorch forward semantics.
    ref_f32 = _reference_f32(x, w, b, gamma)
    assert jnp.allclose(out, ref_f32, atol=2e-2, rtol=2e-2), "f32 ref mismatch"

    # bf16 activation-streaming path (halves HBM bytes on this mem-bound op).
    x_bf16 = x.astype(jnp.bfloat16)
    out_bf16 = jax.block_until_ready(residual_block_pallas(x_bf16, w, b, gamma))
    assert out_bf16.shape == (N, C, H, W) and out_bf16.dtype == jnp.bfloat16
    ref_b = _reference_bf16(x_bf16.astype(jnp.float32), w, b, gamma)
    assert jnp.allclose(out_bf16.astype(jnp.float32), ref_b,
                        atol=3e-2, rtol=3e-2), "bf16-stream ref mismatch"

    print("KERNEL_OK")
</pallas_src>

<mosaic_0001>
module attributes {stable_mosaic.version = 11 : i64} {
  func.func @_residual_block_kernel(%arg0: i32, %arg1: i32, %arg2: memref<1x4x128xf32, #tpu.memory_space<vmem>>, %arg3: memref<4x4xbf16, #tpu.memory_space<vmem>>, %arg4: memref<4x1xf32, #tpu.memory_space<vmem>>, %arg5: memref<1x4x128xf32, #tpu.memory_space<vmem>>) attributes {dimension_semantics = [#tpu.dimension_semantics<parallel>, #tpu.dimension_semantics<parallel>], iteration_bounds = array<i64: 2, 2>, scalar_prefetch = 0 : i64, scratch_operands = 0 : i64, tpu.core_type = #tpu.core_type<tc>, window_params = [{transform_indices = @transform_0, window_bounds = array<i64: 1, 4, 128>}, {pipeline_mode = #tpu.pipeline_mode<synchronous>, transform_indices = @transform_1, window_bounds = array<i64: 4, 4>}, {pipeline_mode = #tpu.pipeline_mode<synchronous>, transform_indices = @transform_2, window_bounds = array<i64: 4, 1>}, {transform_indices = @transform_3, window_bounds = array<i64: 1, 4, 128>}]} {
    %c0 = arith.constant 0 : index
    %c0_0 = arith.constant 0 : index
    %c0_1 = arith.constant 0 : index
    %0 = vector.load %arg2[%c0, %c0_0, %c0_1] : memref<1x4x128xf32, #tpu.memory_space<vmem>>, vector<1x4x128xf32>
    %1 = vector.shape_cast %0 : vector<1x4x128xf32> to vector<4x128xf32>
    %c0_2 = arith.constant 0 : index
    %c0_3 = arith.constant 0 : index
    %2 = vector.load %arg3[%c0_2, %c0_3] : memref<4x4xbf16, #tpu.memory_space<vmem>>, vector<4x4xbf16>
    %3 = arith.truncf %1 : vector<4x128xf32> to vector<4x128xbf16>
    %cst = arith.constant dense<0.000000e+00> : vector<4x128xf32>
    %4 = tpu.matmul %2, %3, %cst {dimension_numbers = #tpu.dot_dimension_numbers<[1], [0], [0], [1], [0, 0, 1, 1], [], []>} : vector<4x4xbf16>, vector<4x128xbf16>, vector<4x128xf32> -> vector<4x128xf32>
    %c0_4 = arith.constant 0 : index
    %c0_5 = arith.constant 0 : index
    %5 = vector.load %arg4[%c0_4, %c0_5] : memref<4x1xf32, #tpu.memory_space<vmem>>, vector<4x1xf32>
    %6 = vector.broadcast %5 : vector<4x1xf32> to vector<4x128xf32>
    %7 = arith.addf %4, %6 : vector<4x128xf32>
    %8 = arith.addf %7, %1 : vector<4x128xf32>
    %cst_6 = arith.constant 0.000000e+00 : f32
    %9 = vector.broadcast %cst_6 : f32 to vector<4x128xf32>
    %10 = arith.maximumf %8, %9 : vector<4x128xf32>
    %c0_7 = arith.constant 0 : index
    %c0_8 = arith.constant 0 : index
    %c0_9 = arith.constant 0 : index
    %11 = vector.load %arg5[%c0_7, %c0_8, %c0_9] : memref<1x4x128xf32, #tpu.memory_space<vmem>>, vector<1x4x128xf32>
    %12 = vector.shape_cast %11 : vector<1x4x128xf32> to vector<4x128xf32>
    %13 = vector.shape_cast %10 : vector<4x128xf32> to vector<1x4x128xf32>
    tpu.vector_store %arg5[%c0_7, %c0_8, %c0_9], %13 {strides = array<i32>} : memref<1x4x128xf32, #tpu.memory_space<vmem>>, vector<1x4x128xf32>,
    return
  }
  func.func @transform_0(%arg0: i32, %arg1: i32) -> (i32, i32, i32) {
    %c0_i32 = arith.constant 0 : i32
    %c0_i32_0 = arith.constant 0 : i32
    return %arg0, %c0_i32, %arg1 : i32, i32, i32
  }
  func.func @transform_1(%arg0: i32, %arg1: i32) -> (i32, i32) {
    %c0_i32 = arith.constant 0 : i32
    %c0_i32_0 = arith.constant 0 : i32
    %c0_i32_1 = arith.constant 0 : i32
    return %c0_i32, %c0_i32_0 : i32, i32
  }
  func.func @transform_2(%arg0: i32, %arg1: i32) -> (i32, i32) {
    %c0_i32 = arith.constant 0 : i32
    %c0_i32_0 = arith.constant 0 : i32
    %c0_i32_1 = arith.constant 0 : i32
    return %c0_i32, %c0_i32_0 : i32, i32
  }
  func.func @transform_3(%arg0: i32, %arg1: i32) -> (i32, i32, i32) {
    %c0_i32 = arith.constant 0 : i32
    %c0_i32_0 = arith.constant 0 : i32
    return %arg0, %c0_i32, %arg1 : i32, i32, i32
  }
}

</mosaic_0001>

<bundles_post_ra>
// kernel: tpu_custom_call.1
= control target key start
LH: loop header
LB: loop body
LE: loop exit
PB: predicated region body
PF: predicated region fallthrough
CT: control target
= control target key end

     0   :  { %8 = vsyncpa [#allocation3], 0  ;;  %s827_s0 = inlined_call_operand.hbm [shape: f32[2,4,256], index: 0, kind: input, shape index: {}]   ;;  %s828_s1 = inlined_call_operand.vmem [shape: bf16[4,4], index: 1, kind: input, shape index: {}]   ;;  %s829_s2 = inlined_call_operand.vmem [shape: f32[4,1], index: 2, kind: input, shape index: {}]   ;;  %s830_s3 = inlined_call_operand.hbm [shape: f32[2,4,256], index: 3, kind: output, shape index: {}]  }
   0x1   :  { %10 = vsyncpa [#allocation3 + $0x1], 0 }
   0x2   :  { %11 = vsyncpa [#allocation4], 0 }
   0x3   :  { %13 = vsyncpa [#allocation4 + $0x1], 0  ;;  %s627_s12 = smov 0   ;;  %s629_s13 = smov 0  }
   0x4   :  { %s631_s14 = smov 0   ;;  %s633_s15 = smov 0  }
   0x5   :  { %s635_s16 = smov 0   ;;  %s637_s17 = smov 0  }
   0x6   :  { %s639_s18 = smov 0   ;;  %s641_s19 = smov 0  }
   0x7 LB: > { %s366_s20 = sadd.s32 4294967295, %s600_s19   ;;  %s367_s21 = sadd.s32 4294967294, %s600_s19   ;;  %s600_s19 = sphi %s641_s19, %s19_s19   ;;  %s596_s18 = sphi %s639_s18, %s847_s18   ;;  %s592_s17 = sphi %s637_s17, %s846_s17   ;;  %s588_s16 = sphi %s635_s16, %s845_s16   ;;  %s584_s15 = sphi %s633_s15, %s844_s15   ;;  %s580_s14 = sphi %s631_s14, %s843_s14   ;;  %s576_s13 = sphi %s629_s13, %s842_s13   ;;  %s572_s12 = sphi %s627_s12, %s841_s12  }
   0x8   : > { %s28_s22 = sadd.s32 1, %s592_s17  ;;  %s31_s23 = sadd.s32 1, %s596_s18 }
   0x9   : > { %p29_p0 = scmp.ge.s32.totalorder %s28_s22, 2  ;;  %s40_s24 = sadd.s32 1, %s580_s14 }
   0xa   : > { %p47_p1 = scmp.ne.s32.totalorder %s580_s14, %s576_s13  ;;  %p48_p2 = scmp.eq.s32.totalorder %s600_s19, 0 }
   0xb   : > { %s849_s22 = smov (%p29_p0, %s28_s22), 0  ;;  %s851_s23 = smov (!%p29_p0, %s31_s23), %s596_s18 }
   0xc   : > { %s36_s25 = ssub.s32 %s592_s17, %s849_s22  ;;  %p680_p3 = por %p48_p2, %p47_p1 }
   0xd   : > { %p33_p4 = scmp.ge.s32.totalorder %s851_s23, 2  ;;  %p53_p5 = scmp.ne.s32.totalorder %s576_s13, %s572_s12 }
   0xe   : > { %p54_p6 = scmp.eq.s32.totalorder %s366_s20, 0  ;;  %p121_p7 = scmp.eq.s32.totalorder %s366_s20, 3 }
   0xf   : > { %s853_s23 = smov (%p33_p4, %s851_s23), 0  ;;  %p127_p10 = scmp.eq.s32.totalorder %s367_s21, 3 }
  0x10   : > { %p688_p8 = por %p54_p6, %p53_p5  ;;  %p692_p9 = por %p121_p7, %p47_p1 }
  0x11   : > { %s35_s29 = ssub.s32 %s596_s18, %s853_s23  ;;  %p698_p12 = por %p127_p10, %p53_p5 }
  0x12   : > { %s834_s28 = scalar_select %p692_p9, 1, 0 }
  0x13   : > { %s37_s30 = sor.u32 %s36_s25, %s35_s29  ;;  %p402_p13 = scmp.lt.s32.totalorder %s600_s19, 4 }
  0x14   : > { %p38_p11 = scmp.eq.s32.totalorder %s37_s30, 0  ;;  %s153_s5 = sand.u32 1, %s580_s14  }
  0x15   : > { %s835_s4 = scalar_select %p698_p12, 1, 0 }
  0x16   : > { %s705_s6 = scalar_select %p38_p11, %s580_s14, %s40_s24  }
  0x17   : > { %s370_s7 = sshll.u32 %s153_s5, 2  ;;  %s371_s8 = sshll.u32 %s596_s18, 1 }
  0x18   : > { %s162_s9 = sadd.s32 %s592_s17, %s371_s8  ;;  %s157_s10 = scalar_lea.vmem [#allocation2], %s370_s7 }
  0x19   : > { %s166_s11 = sshll.u32 %s157_s10, 4  ;;  %s372_s20 = sshll.u32 %s162_s9, 6  ;;  %s709_s11 = int_to_ptr.vmem [resolvable:$true] %s166_s11 }
  0x1a   : > { %s714_s29 = scalar_lea.hbm %s827_s0, %s372_s20  ;;  %p718_p0 = pnand %p402_p13, %p680_p3 }
  0x1b   : > { %s154_s30 = scalar_lea.sflag [#allocation3], %s153_s5  ;;  %s472_s7 = scalar_lea.hbm %s714_s29, 64 }
  0x1c   : > { %p473_p4 = scmp.ne.s32.totalorder %s714_s29, %s472_s7  ;;  %p474_p5 = pneg %p718_p0 }
  0x1d   : > { %s477_s9 = scalar_lea.hbm %s827_s0, 256  ;;  %p478_p3 = scmp.lt.u32.totalorder %s714_s29, %s827_s0 }
  0x1e   : > { %p475_p6 = pnand %p474_p5, %p473_p4  ;;  %p479_p10 = scmp.lt.u32.totalorder %s477_s9, %s472_s7 }
  0x1f   : > { %p481_p13 = scmp.lt.u32.totalorder %s472_s7, %s714_s29 }
  0x20   : > { %p476_p7 = pneg %p475_p6  ;;  %p480_p11 = por %p479_p10, %p478_p3 }
  0x22   : > { %p482_p1 = por %p481_p13, %p480_p11 }
  0x24   : > { %p483_p2 = pnand %p482_p1, %p476_p7 }
  0x26   : > { %486 = shalt.err (!%p483_p2)
}
  0x27   : > { %s487_s5 = scalar_lea.vmem %s709_s11, 64  ;;  %s602_s21 = smov [#allocation2]  }
  0x28   : > { %p488_p4 = scmp.ne.s32.totalorder %s709_s11, %s487_s5  ;;  %s492_s25 = sshll.u32 %s602_s21, 4  ;;  %s493_s25 = int_to_ptr.vmem [resolvable:$false] %s492_s25 }
  0x29   : > { %s494_s26 = scalar_lea.vmem %s493_s25, 128  ;;  %p495_p9 = scmp.lt.s32.totalorder %s709_s11, %s493_s25 }
  0x2a   : > { %p490_p6 = pnand %p488_p4, %p474_p5  ;;  %p496_p3 = scmp.lt.s32.totalorder %s494_s26, %s487_s5 }
  0x2c   : > { %p491_p12 = pneg %p490_p6  ;;  %p497_p10 = por %p496_p3, %p495_p9 }
  0x2e   : > { %p498_p11 = pnand %p497_p10, %p491_p12 }
  0x30   : > { %501 = shalt.err (!%p498_p11)
}
  0x31   : > { %397 = dma.hbm_to_vmem [thread:$0]  (!%p718_p0), %s714_s29, 64, %s709_s11, %s154_s30  }
  0x32   : > { %p837_p1 = scmp.lt.s32.totalorder %s600_s19, 5  ;;  %p838_p2 = scmp.ge.s32.totalorder %s600_s19, 1 }
  0x34   : > { %p172_p5 = pnand %p838_p2, %p837_p1 }
  0x35   : > { %s754_s7 = sand.u32 (!%p172_p5), 1, %s576_s13  }
  0x36   : > { %175 = sbr.rel (%p172_p5) target bundleno = 301 (0x12d), region = 32  ;;  %s374_s8 = sshll.u32 (!%p172_p5), %s754_s7, 2 }
  0x37   : > { %s178_s9 = scalar_lea.sflag (!%p172_p5), [#allocation3], %s754_s7  ;;  %s181_s10 = scalar_lea.vmem (!%p172_p5), [#allocation2], %s374_s8 }
  0x3d   : > { %563 = dma.done.wait (%p688_p8), %s178_s9, 64  }
  0x3e   : > { %565 = vsyncadd (%p688_p8), %s178_s9, 4294967232  ;;  %v603_v0 = vmov 0.0   ;;  %vm604_vm0 = vmmov 0   ;;  %v605_v1 = vmov 0   ;;  %v205_v2 = vld [vmem:[%s181_s10] sm:$0xf] }
  0x3f   : > { %384 = vmatprep.subr.bf16.mxu0 %v603_v0  ;;  %386 = vmatprep.mubr.msk.bf16.mxu0 %vm604_vm0, %v603_v0  ;;  %vm218_vm1 = vcmask 1041408   ;;  %v208_v3 = vld [vmem:[%s829_s2] sm:$0xf]  ;;  %v207_v4 = vpack.c.bf16 %v205_v2, %v205_v2  ;;  %vm214_vm2 = vcmask 31744   ;;  %s378_s30 = sshll.u32 %s588_s16, 1  ;;  %s203_s21 = scalar_lea.vmem [#allocation5], %s374_s8 }
  0x40   : > { %471 = vset.pattern.permute.xlu0 %v605_v1  ;;  %v206_v6 = vld [vmem:[%s828_s1] sm:$0x3]  ;;  %s277_s20 = sadd.s32 %s584_s15, %s378_s30  ;;  %s281_s25 = sshll.u32 %s203_s21, 4  ;;  %s775_s25 = int_to_ptr.vmem [resolvable:$true] %s281_s25 }
  0x41   : > { %211 = vperm.xlu0 %471, %v208_v3   ;;  %v220_v5 = vsel %vm218_vm1, %v207_v4, 0  ;;  %s379_s5 = sshll.u32 %s277_s20, 6  ;;  %s266_s15 = scalar_lea.sflag [#allocation4], %s754_s7 }
  0x42   : > { %385 = vmatpush3.bf16.msra.mxu0 %v220_v5  ;;  %s773_s10 = scalar_lea.hbm %s830_s3, %s379_s5  ;;  %s502_s16 = scalar_lea.vmem %s775_s25, 64 }
  0x43   : > { %p503_p8 = scmp.ne.s32.totalorder %s775_s25, %s502_s16  ;;  %p839_p9 = scmp.ne.s32.totalorder %s834_s28, 0 }
  0x44   : > { %s606_s8 = smov [#allocation5]  }
  0x45   : > { %387 = vmatmul.mubr.msk.bf16.vlgmr.msra.gmra.mrb[0].mxu0 %vm214_vm2, %v206_v6  ;;  %p504_p12 = pnand %p503_p8, %p839_p9  ;;  %s506_s11 = sshll.u32 %s606_s8, 4  ;;  %s507_s11 = int_to_ptr.vmem [resolvable:$false] %s506_s11 }
  0x46   : > { %s508_s29 = scalar_lea.vmem %s507_s11, 128  ;;  %p509_p7 = scmp.lt.s32.totalorder %s775_s25, %s507_s11 }
  0x47   : > { %p505_p0 = pneg %p504_p12  ;;  %p510_p13 = scmp.lt.s32.totalorder %s508_s29, %s502_s16 }
  0x49   : > { %p511_p4 = por %p510_p13, %p509_p7 }
  0x4b   : > { %p512_p6 = pnand %p511_p4, %p505_p0 }
  0xc0   : > { %v212_v7 = vpop.permute.xlu0 %211 }
 0x118   : > { %v256_v8 = vpop.f32.mrb[0].mxu0 }
 0x119   : > { %v257_v9 = vadd.f32 %v256_v8, %v212_v7  ;;  %v388_v10 = vpop.f32.mrb[1].mxu0 }
 0x11a   : > { %v259_v11 = vpop.f32.mrb[2].mxu0 }
 0x11b   : > { %v262_v12 = vadd.f32 %v257_v9, %v205_v2  ;;  %v389_v13 = vpop.f32.mrb[3].mxu0 }
 0x11d   : > { %v263_v14 = vmax.f32 %v262_v12, 0.0 }
 0x11f   : > { %264 = vst [vmem:[%s203_s21] sm:$0xf] %v263_v14 }
 0x120   : > { %515 = shalt.err (!%p512_p6)
}
 0x121   : > { %s516_s7 = scalar_lea.hbm %s773_s10, 64  ;;  %s520_s30 = scalar_lea.hbm %s830_s3, 256 }
 0x122   : > { %p517_p3 = scmp.ne.s32.totalorder %s773_s10, %s516_s7  ;;  %p521_p1 = scmp.lt.u32.totalorder %s773_s10, %s830_s3 }
 0x123   : > { %p522_p2 = scmp.lt.u32.totalorder %s520_s30, %s516_s7  ;;  %p524_p8 = scmp.lt.u32.totalorder %s516_s7, %s773_s10 }
 0x124   : > { %p518_p10 = pnand %p517_p3, %p839_p9 }
 0x125   : > { %p523_p5 = por %p522_p2, %p521_p1 }
 0x126   : > { %p519_p11 = pneg %p518_p10 }
 0x127   : > { %p525_p12 = por %p524_p8, %p523_p5 }
 0x129   : > { %p526_p0 = pnand %p525_p12, %p519_p11 }
 0x12b   : > { %529 = shalt.err (!%p526_p0)
}
 0x12c   : > { %392 = dma.vmem_to_hbm [thread:$0]  (%p839_p9), %s775_s25, 64, %s773_s10, %s266_s15  }
 0x12d PF: > { %p403_p7 = scmp.ge.s32.totalorder %s600_s19, 2  ;;  %s293_s21 = sand.u32 1, %s572_s12  }
 0x12e   : > { %p840_p13 = scmp.ne.s32.totalorder %s835_s4, 0  ;;  %s294_s26 = scalar_lea.sflag [#allocation4], %s293_s21 }
 0x130   : > { %p399_p4 = pnand %p403_p7, %p840_p13 }
 0x132   : > { %567 = dma.done.wait (!%p399_p4), %s294_s26, 64  }
 0x133   : > { %569 = vsyncadd (!%p399_p4), %s294_s26, 4294967232  ;;  %s19_s19 = sadd.s32 1, %s600_s19   ;;  %s841_s12 = smov %s576_s13 }
 0x134   : > { %p16_p6 = scmp.ge.s32.totalorder %s19_s19, 6   ;;  %s842_s13 = smov %s580_s14 }
 0x135   : > { %s843_s14 = smov %s705_s6  ;;  %s844_s15 = smov %s592_s17 }
 0x136   : > { %s845_s16 = smov %s596_s18  ;;  %s846_s17 = smov %s849_s22 }
 0x137   : > { %s847_s18 = smov %s853_s23  ;;  %18 = sbr.rel (!%p16_p6) target bundleno = 7 (0x7), region = 77 }
 0x13e   :  { %299 = vsyncpa [#allocation3], 1 }
 0x13f   :  { %301 = vsyncpa [#allocation3 + $0x1], 1 }
 0x140   :  { %302 = vsyncpa [#allocation4], 1 }
 0x141   :  { %304 = vsyncpa [#allocation4 + $0x1], 1 }

</bundles_post_ra>
